<compile_context>
chip_gen: v5e
topology: v5e:2x2
jax: 0.10.0
libtpu: 0.0.40
codegen_flags: <defaults>
</compile_context>

<pallas_src>
import functools
import math

import jax
import jax.numpy as jnp
from jax.experimental import pallas as pl
from jax.experimental.pallas import tpu as pltpu


def _layernorm_kernel(x_ref, gb_ref, o_ref, *, eps):
    # x_ref: (tile_rows, d_model) in VMEM; gb_ref: (2, d_model) f32 = [gamma; beta].
    x = x_ref[...].astype(jnp.float32)
    gamma = gb_ref[0:1, :]
    beta = gb_ref[1:2, :]
    mean = jnp.mean(x, axis=-1, keepdims=True)
    centered = x - mean
    var = jnp.mean(centered * centered, axis=-1, keepdims=True)  # unbiased=False
    inv = jax.lax.rsqrt(var + eps)
    out = gamma * (centered * inv) + beta
    o_ref[...] = out.astype(o_ref.dtype)


def _round_up(a, m):
    return ((a + m - 1) // m) * m


def _vmem_capacity_bytes():
    """Best-effort per-core VMEM capacity query; conservative fallback."""
    try:
        cap = getattr(pltpu.get_tpu_info(), "vmem_capacity_bytes", None)
        if cap:
            return int(cap)
    except Exception:
        pass
    return 64 << 20  # conservative (v7x-sized) assumption


def _target_block_bytes(vmem_cap):
    # v7x-class (<=64 MiB VMEM, ~3.2 TB/s HBM): bigger blocks to amortize the
    # ~0.35 us/step overhead. v5e/v6e (128 MiB VMEM): ~4 MiB is already ~86% of
    # the HBM roofline.
    if vmem_cap <= (64 << 20):
        return 6 << 20
    return 4 << 20


def _choose_tile_rows(rows, d_model, dtype, target_block_bytes):
    """Pick tile rows so one input block is ~target_block_bytes.

    Bounded only by the byte budget and the (sublane-rounded) total row count
    (no arbitrary row cap), then split if needed so the grid has >= 2 steps and
    both v7x TensorCores get work.
    """
    itemsize = jnp.dtype(dtype).itemsize
    row_bytes = max(d_model * itemsize, 1)
    # Sublane packing multiple: 8 for 32-bit, 16 for 16-bit, 32 for 8-bit.
    mult = max(8, 32 // itemsize)

    tr = target_block_bytes // row_bytes
    tr = max(mult, (tr // mult) * mult)          # floor to packing multiple
    tr = min(tr, _round_up(rows, mult))          # never exceed the whole array

    # Guarantee >= 2 grid steps whenever rows allow it (megacore sharding).
    if rows > mult and pl.cdiv(rows, tr) < 2:
        tr = max(mult, _round_up(pl.cdiv(rows, 2), mult))
    return int(tr)


def layernorm(x, gamma, beta, eps=1e-12, tile_rows=None):
    """x: (..., d_model); gamma, beta: (d_model,). Matches the module's forward.

    Note: this module's default eps is 1e-12 (torch.nn.LayerNorm would be 1e-5).
    """
    orig_shape = x.shape
    d_model = orig_shape[-1]
    rows = int(math.prod(orig_shape[:-1])) if len(orig_shape) > 1 else 1
    x2 = x.reshape(rows, d_model)

    vmem_cap = _vmem_capacity_bytes()
    if tile_rows is None:
        tile_rows = _choose_tile_rows(
            rows, d_model, x.dtype, _target_block_bytes(vmem_cap)
        )

    # Fuse parameters into a single resident (2, d_model) f32 block; cast once.
    gb = jnp.stack(
        [gamma.astype(jnp.float32), beta.astype(jnp.float32)], axis=0
    )  # (2, d_model)

    grid = (pl.cdiv(rows, tile_rows),)

    # Footprint-derived VMEM limit: double-buffered in + out blocks, resident
    # params, +25% headroom for Mosaic internal scratch. Never the full 64 MiB.
    itemsize = jnp.dtype(x.dtype).itemsize
    block_bytes = tile_rows * d_model * itemsize
    param_bytes = 2 * d_model * 4
    footprint = 2 * 2 * block_bytes + 2 * param_bytes
    vmem_limit = int(footprint * 1.25)
    vmem_limit = min(48 << 20, max(32 << 20, vmem_limit))

    out2 = pl.pallas_call(
        functools.partial(_layernorm_kernel, eps=eps),
        out_shape=jax.ShapeDtypeStruct((rows, d_model), x.dtype),
        grid_spec=pltpu.PrefetchScalarGridSpec(
            num_scalar_prefetch=0,
            grid=grid,
            in_specs=[
                pl.BlockSpec((tile_rows, d_model), lambda i: (i, 0)),
                pl.BlockSpec((2, d_model), lambda i: (0, 0)),
            ],
            out_specs=pl.BlockSpec((tile_rows, d_model), lambda i: (i, 0)),
        ),
        compiler_params=pltpu.CompilerParams(
            dimension_semantics=("parallel",),
            vmem_limit_bytes=vmem_limit,
        ),
    )(x2, gb)

    return out2.reshape(orig_shape)


if __name__ == "__main__":
    key = jax.random.PRNGKey(0)
    batch, seq, d_model = 2, 8, 32
    eps = 1e-12  # module's default (NOT torch.nn.LayerNorm's 1e-5)

    # NOTE: d_model=32 (test config) only fills 1/4 of each vreg lane row; for
    # production shapes keep d_model a multiple of 128 for lane-dense stores.
    x = jax.random.normal(key, (batch, seq, d_model), dtype=jnp.float32)
    # Deterministic parameter init matching nn.Parameter(torch.ones/zeros(d_model)).
    gamma = jnp.ones((d_model,), dtype=jnp.float32)
    beta = jnp.zeros((d_model,), dtype=jnp.float32)

    out = layernorm(x, gamma, beta, eps=eps)
    out = jax.block_until_ready(out)

    # Reference check in plain JAX (same semantics as the PyTorch forward).
    mean = jnp.mean(x, axis=-1, keepdims=True)
    var = jnp.mean((x - mean) ** 2, axis=-1, keepdims=True)
    ref = gamma * ((x - mean) / jnp.sqrt(var + eps)) + beta
    assert jnp.allclose(out, ref, atol=1e-5, rtol=1e-5), "mismatch vs reference"

    print("KERNEL_OK")
</pallas_src>

<mosaic_0001>
module attributes {stable_mosaic.version = 11 : i64} {
  func.func @_layernorm_kernel(%arg0: i32, %arg1: memref<8x32xf32, #tpu.memory_space<vmem>>, %arg2: memref<2x32xf32, #tpu.memory_space<vmem>>, %arg3: memref<8x32xf32, #tpu.memory_space<vmem>>) attributes {dimension_semantics = [#tpu.dimension_semantics<parallel>], iteration_bounds = array<i64: 2>, scalar_prefetch = 0 : i64, scratch_operands = 0 : i64, tpu.core_type = #tpu.core_type<tc>, window_params = [{transform_indices = @transform_0, window_bounds = array<i64: 8, 32>}, {pipeline_mode = #tpu.pipeline_mode<synchronous>, transform_indices = @transform_1, window_bounds = array<i64: 2, 32>}, {transform_indices = @transform_2, window_bounds = array<i64: 8, 32>}]} {
    %c0 = arith.constant 0 : index
    %c0_0 = arith.constant 0 : index
    %0 = vector.load %arg1[%c0, %c0_0] : memref<8x32xf32, #tpu.memory_space<vmem>>, vector<8x32xf32>
    %c0_1 = arith.constant 0 : index
    %c0_2 = arith.constant 0 : index
    %1 = vector.load %arg2[%c0_1, %c0_2] : memref<2x32xf32, #tpu.memory_space<vmem>>, vector<1x32xf32>
    %c1 = arith.constant 1 : index
    %c0_3 = arith.constant 0 : index
    %2 = vector.load %arg2[%c1, %c0_3] : memref<2x32xf32, #tpu.memory_space<vmem>>, vector<1x32xf32>
    %cst = arith.constant dense<0.000000e+00> : vector<8xf32>
    %3 = vector.multi_reduction <add>, %0, %cst [1] : vector<8x32xf32> to vector<8xf32>
    %4 = vector.shape_cast %3 : vector<8xf32> to vector<8x1xf32>
    %cst_4 = arith.constant 3.200000e+01 : f32
    %5 = vector.broadcast %cst_4 : f32 to vector<8x1xf32>
    %6 = arith.divf %4, %5 : vector<8x1xf32>
    %7 = vector.broadcast %6 : vector<8x1xf32> to vector<8x32xf32>
    %8 = arith.subf %0, %7 : vector<8x32xf32>
    %9 = arith.mulf %8, %8 : vector<8x32xf32>
    %cst_5 = arith.constant dense<0.000000e+00> : vector<8xf32>
    %10 = vector.multi_reduction <add>, %9, %cst_5 [1] : vector<8x32xf32> to vector<8xf32>
    %11 = vector.shape_cast %10 : vector<8xf32> to vector<8x1xf32>
    %cst_6 = arith.constant 3.200000e+01 : f32
    %12 = vector.broadcast %cst_6 : f32 to vector<8x1xf32>
    %13 = arith.divf %11, %12 : vector<8x1xf32>
    %cst_7 = arith.constant 9.99999996E-13 : f32
    %14 = vector.broadcast %cst_7 : f32 to vector<8x1xf32>
    %15 = arith.addf %13, %14 : vector<8x1xf32>
    %16 = math.rsqrt %15 : vector<8x1xf32>
    %17 = vector.broadcast %16 : vector<8x1xf32> to vector<8x32xf32>
    %18 = arith.mulf %8, %17 : vector<8x32xf32>
    %19 = vector.broadcast %1 : vector<1x32xf32> to vector<8x32xf32>
    %20 = arith.mulf %19, %18 : vector<8x32xf32>
    %21 = vector.broadcast %2 : vector<1x32xf32> to vector<8x32xf32>
    %22 = arith.addf %20, %21 : vector<8x32xf32>
    %c0_8 = arith.constant 0 : index
    %c0_9 = arith.constant 0 : index
    %23 = vector.load %arg3[%c0_8, %c0_9] : memref<8x32xf32, #tpu.memory_space<vmem>>, vector<8x32xf32>
    tpu.vector_store %arg3[%c0_8, %c0_9], %22 {strides = array<i32>} : memref<8x32xf32, #tpu.memory_space<vmem>>, vector<8x32xf32>,
    return
  }
  func.func @transform_0(%arg0: i32) -> (i32, i32) {
    %c0_i32 = arith.constant 0 : i32
    %c0_i32_0 = arith.constant 0 : i32
    return %arg0, %c0_i32 : i32, i32
  }
  func.func @transform_1(%arg0: i32) -> (i32, i32) {
    %c0_i32 = arith.constant 0 : i32
    %c0_i32_0 = arith.constant 0 : i32
    %c0_i32_1 = arith.constant 0 : i32
    return %c0_i32, %c0_i32_0 : i32, i32
  }
  func.func @transform_2(%arg0: i32) -> (i32, i32) {
    %c0_i32 = arith.constant 0 : i32
    %c0_i32_0 = arith.constant 0 : i32
    return %arg0, %c0_i32 : i32, i32
  }
}

</mosaic_0001>

<bundles_post_ra>
// kernel: tpu_custom_call.1
= control target key start
LH: loop header
LB: loop body
LE: loop exit
PB: predicated region body
PF: predicated region fallthrough
CT: control target
= control target key end

     0   :  { %7 = vsyncpa [#allocation3], 0  ;;  %s682_s0 = inlined_call_operand.hbm [shape: f32[16,32], index: 0, kind: input, shape index: {}]   ;;  %s683_s1 = inlined_call_operand.hbm [shape: f32[2,32], index: 1, kind: input, shape index: {}]   ;;  %s684_s2 = inlined_call_operand.hbm [shape: f32[16,32], index: 2, kind: output, shape index: {}]  }
   0x1   :  { %9 = vsyncpa [#allocation3 + $0x1], 0 }
   0x2   :  { %10 = vsyncpa [#allocation6], 0 }
   0x3   :  { %11 = vsyncpa [#allocation4], 0 }
   0x4   :  { %13 = vsyncpa [#allocation4 + $0x1], 0  ;;  %s537_s9 = smov 0   ;;  %s539_s10 = smov 0  }
   0x5   :  { %s541_s11 = smov 0   ;;  %s543_s12 = smov 0  }
   0x6 LB: > { %s558_s13 = sadd.s32 4294967295, %s518_s12   ;;  %s310_s14 = sadd.s32 4294967294, %s518_s12   ;;  %s518_s12 = sphi %s543_s12, %s694_s12   ;;  %s514_s11 = sphi %s541_s11, %s693_s11   ;;  %s510_s10 = sphi %s539_s10, %s692_s10   ;;  %s506_s9 = sphi %s537_s9, %s691_s9  }
   0x7   : > { %p39_p0 = scmp.ne.s32.totalorder %s510_s10, %s506_s9  ;;  %p40_p1 = scmp.eq.s32.totalorder %s558_s13, 0 }
   0x8   : > { %p84_p2 = scmp.eq.s32.totalorder %s558_s13, 1  ;;  %p90_p3 = scmp.eq.s32.totalorder %s310_s14, 1 }
   0x9   : > { %p567_p4 = por %p40_p1, %p39_p0  ;;  %p311_p5 = scmp.ge.s32.totalorder %s518_s12, 1 }
   0xa   : > { %p572_p6 = por %p90_p3, %p39_p0  ;;  %p97_p7 = scmp.lt.s32.totalorder %s518_s12, 3 }
   0xb   : > { %s109_s19 = sshll.u32 %s683_s1, 4  ;;  %s520_s21 = smov [#allocation5]   ;;  %s110_s19 = int_to_ptr.hbm [resolvable:$true] %s109_s19 }
   0xc   : > { %p580_p8 = pnand %p311_p5, %p97_p7  ;;  %s111_s22 = sshll.u32 %s520_s21, 4  ;;  %s112_s22 = int_to_ptr.vmem [resolvable:$true] %s111_s22 }
   0xd   : > { %s590_s23 = sadd.s32 1, %s518_s12   ;;  %s26_s24 = sadd.s32 1, %s514_s11 }
   0xe   : > { %p332_p10 = pneg %p580_p8  ;;  %s23_s25 = ssub.s32 %s518_s12, %s590_s23 }
   0xf   : > { %p24_p12 = scmp.eq.s32.totalorder %s23_s25, 0  ;;  %p33_p13 = scmp.ne.s32.totalorder %s514_s11, %s510_s10 }
  0x10   : > { %p333_p11 = pnand %p332_p10, %p40_p1  ;;  %p34_p0 = scmp.eq.s32.totalorder %s518_s12, 0 }
  0x11   : > { %s599_s26 = scalar_select %p24_p12, %s514_s11, %s26_s24  }
  0x12   : > { %335 = dma.hbm_to_vmem [thread:$0]  (!%p333_p11), %s110_s19, 32, %s112_s22, [#allocation6]  }
  0x13   : > { %p603_p3 = por %p84_p2, %p33_p13  ;;  %p345_p5 = scmp.lt.s32.totalorder %s518_s12, 2 }
  0x14   : > { %s122_s28 = sand.u32 1, %s514_s11   ;;  %s315_s29 = sshll.u32 %s518_s12, 3 }
  0x15   : > { %p35_p7 = por %p34_p0, %p33_p13  ;;  %s314_s30 = sshll.u32 %s122_s28, 3 }
  0x16   : > { %s130_s5 = scalar_lea.hbm %s682_s0, %s315_s29  ;;  %s126_s7 = scalar_lea.vmem [#allocation2], %s314_s30 }
  0x17   : > { %s132_s6 = sshll.u32 %s130_s5, 4  ;;  %s134_s8 = sshll.u32 %s126_s7, 4  ;;  %s133_s6 = int_to_ptr.hbm [resolvable:$true] %s132_s6  ;;  %s135_s8 = int_to_ptr.vmem [resolvable:$true] %s134_s8 }
  0x18   : > { %p613_p10 = pnand %p345_p5, %p35_p7  ;;  %s123_s17 = scalar_lea.sflag [#allocation3], %s122_s28 }
  0x19   : > { %s418_s18 = sshra.s32 %s133_s6, 4  ;;  %s425_s24 = scalar_lea.hbm %s682_s0, 16  ;;  %s419_s18 = int_to_ptr.hbm [resolvable:$true] %s418_s18 }
  0x1a   : > { %s420_s19 = scalar_lea.hbm %s419_s18, 8  ;;  %p422_p11 = pneg %p613_p10 }
  0x1b   : > { %p421_p2 = scmp.ne.s32.totalorder %s419_s18, %s420_s19  ;;  %p426_p0 = scmp.lt.s32.totalorder %s419_s18, %s682_s0 }
  0x1c   : > { %p427_p5 = scmp.lt.s32.totalorder %s425_s24, %s420_s19 }
  0x1d   : > { %p423_p12 = pnand %p422_p11, %p421_p2 }
  0x1e   : > { %p428_p7 = por %p427_p5, %p426_p0 }
  0x1f   : > { %p424_p13 = pneg %p423_p12 }
  0x21   : > { %p429_p9 = pnand %p428_p7, %p424_p13 }
  0x23   : > { %432 = shalt.err (!%p429_p9)
}
  0x24   : > { %339 = dma.hbm_to_vmem [thread:$0]  (!%p613_p10), %s133_s6, 128, %s135_s8, %s123_s17  }
  0x25   : > { %143 = sbr.rel (%p580_p8) target bundleno = 317 (0x13d), region = 28  ;;  %s630_s28 = sand.u32 (!%p580_p8), 1, %s510_s10  }
  0x26   : > { %s317_s30 = sshll.u32 (!%p580_p8), %s630_s28, 3  ;;  %s146_s3 = scalar_lea.sflag (!%p580_p8), [#allocation3], %s630_s28 }
  0x27   : > { %s149_s4 = scalar_lea.vmem (!%p580_p8), [#allocation2], %s317_s30 }
  0x2a   : > { %493 = dma.done.wait (%p567_p4), %s146_s3, 128  }
  0x2b   : > { %495 = vsyncadd (%p567_p4), %s146_s3, 4294967168 }
  0x2c   : > { %497 = dma.done.wait (%p40_p1), [#allocation6], 32  }
  0x2d   : > { %499 = vsyncadd (%p40_p1), [#allocation6], 4294967264  ;;  %vm179_vm0 = vcmask 261120   ;;  %v176_v0 = vld [vmem:[%s149_s4] sm:$0xff]  ;;  %v521_v2 = vmov 32.0   ;;  %s321_s15 = sshll.u32 %s558_s13, 3 }
  0x2e   : > { %v180_v1 = vsel %vm179_vm0, %v176_v0, 0.0  ;;  %384 = vrcp.f32 %v521_v2  ;;  %v382_v23 = vld [vmem:[#allocation5] ss:$0 sm:$0xff]  ;;  %s225_s6 = scalar_lea.hbm %s684_s2, %s321_s15  ;;  %v383_v26 = vld [vmem:[#allocation5 + $0x1] ss:$0 sm:$0xff]  ;;  %s175_s7 = scalar_lea.vmem [#allocation7], %s317_s30 }
  0x2f   : > { %181 = vadd.xlane.f32.xlu0 %v180_v1  ;;  %s227_s8 = sshll.u32 %s175_s7, 4  ;;  %s229_s14 = sshll.u32 %s225_s6, 4  ;;  %s228_s8 = int_to_ptr.vmem [resolvable:$true] %s227_s8  ;;  %s230_s14 = int_to_ptr.hbm [resolvable:$true] %s229_s14 }
  0x30   : > { %s215_s13 = scalar_lea.sflag [#allocation4], %s630_s28  ;;  %s462_s17 = sshra.s32 %s230_s14, 4  ;;  %s463_s17 = int_to_ptr.hbm [resolvable:$true] %s462_s17 }
  0x31   : > { %s464_s18 = scalar_lea.hbm %s463_s17, 8  ;;  %s468_s22 = scalar_lea.hbm %s684_s2, 16 }
  0x32   : > { %p465_p1 = scmp.ne.s32.totalorder %s463_s17, %s464_s18  ;;  %p469_p9 = scmp.lt.s32.totalorder %s463_s17, %s684_s2 }
  0x33   : > { %p470_p10 = scmp.lt.s32.totalorder %s468_s22, %s464_s18 }
  0x34   : > { %v385_v3 = vpop.eup %384  ;;  %p466_p4 = pnand %p465_p1, %p603_p3 }
  0x35   : > { %v184_v4 = vmul.f32 32.0, %v385_v3  ;;  %vm188_vm1 = vweird.f32 %v385_v3  ;;  %p471_p2 = por %p470_p10, %p469_p9 }
  0x36   : > { %p467_p8 = pneg %p466_p4 }
  0x37   : > { %v185_v5 = vsub.f32 1.0, %v184_v4 }
  0x38   : > { %p472_p11 = pnand %p471_p2, %p467_p8 }
  0x39   : > { %v186_v6 = vmul.f32 %v385_v3, %v185_v5 }
  0x3b   : > { %v187_v7 = vadd.f32 %v385_v3, %v186_v6 }
  0x3d   : > { %v189_v8 = vsel %vm188_vm1, %v385_v3, %v187_v7 }
  0xa2   : > { %v182_v9 = vpop.xlane.xlu0 %181 }
  0xa3   : > { %v190_v10 = vmul.f32 %v189_v8, %v182_v9 }
  0xa5   : > { %v191_v11 = vsub.f32 %v176_v0, %v190_v10 }
  0xa7   : > { %v192_v12 = vmul.f32 %v191_v11, %v191_v11 }
  0xa9   : > { %v193_v13 = vsel %vm179_vm0, %v192_v12, 0.0 }
  0xaa   : > { %194 = vadd.xlane.f32.xlu0 %v193_v13 }
 0x11d   : > { %v195_v14 = vpop.xlane.xlu0 %194 }
 0x11e   : > { %v196_v15 = vmul.f32 %v195_v14, %v189_v8 }
 0x120   : > { %v197_v16 = vadd.f32 1e-12, %v196_v15 }
 0x122   : > { %386 = vrsqrt.f32 %v197_v16  ;;  %vm204_vm3 = vweird.f32 %v197_v16 }
 0x128   : > { %v387_v17 = vpop.eup %386 }
 0x129   : > { %v199_v18 = vmul.f32 %v387_v17, %v197_v16  ;;  %vm205_vm2 = vweird.f32 %v387_v17 }
 0x12a   : > { %vm206_vm4 = vmor %vm204_vm3, %vm205_vm2 }
 0x12b   : > { %v200_v19 = vmul.f32 %v387_v17, %v199_v18 }
 0x12d   : > { %v201_v20 = vmul.f32 0.5, %v200_v19 }
 0x12f   : > { %v202_v21 = vsub.f32 1.5, %v201_v20 }
 0x131   : > { %v203_v22 = vmul.f32 %v387_v17, %v202_v21 }
 0x133   : > { %v207_v24 = vsel %vm206_vm4, %v387_v17, %v203_v22 }
 0x134   : > { %v208_v25 = vmul.f32 %v207_v24, %v191_v11 }
 0x136   : > { %v210_v27 = vmul.f32 %v382_v23, %v208_v25 }
 0x138   : > { %v212_v28 = vadd.f32 %v383_v26, %v210_v27 }
 0x13a   : > { %213 = vst.msk [vmem:[%s175_s7] sm:$0xff] %vm179_vm0, %v212_v28 }
 0x13b   : > { %475 = shalt.err (!%p472_p11)
}
 0x13c   : > { %330 = dma.vmem_to_hbm [thread:$0]  (%p603_p3), %s228_s8, 128, %s230_s14, %s215_s13  }
 0x13d PF: > { %s241_s29 = sand.u32 1, %s506_s9   ;;  %p690_p12 = scmp.ge.s32.totalorder %s518_s12, 2 }
 0x13e   : > { %s242_s28 = scalar_lea.sflag [#allocation4], %s241_s29 }
 0x13f   : > { %p341_p13 = pnand %p690_p12, %p572_p6 }
 0x141   : > { %p342_p0 = pneg %p341_p13 }
 0x143   : > { %501 = dma.done.wait (%p342_p0), %s242_s28, 128  }
 0x144   : > { %503 = vsyncadd (%p342_p0), %s242_s28, 4294967168  ;;  %p16_p5 = scmp.ge.s32.totalorder %s590_s23, 4   ;;  %s691_s9 = smov %s510_s10 }
 0x145   : > { %s692_s10 = smov %s514_s11  ;;  %s693_s11 = smov %s599_s26 }
 0x146   : > { %s694_s12 = smov %s590_s23  ;;  %18 = sbr.rel (!%p16_p5) target bundleno = 6 (0x6), region = 77 }
 0x14b   :  { %248 = vsyncpa [#allocation3], 1 }
 0x14c   :  { %250 = vsyncpa [#allocation3 + $0x1], 1 }
 0x14d   :  { %251 = vsyncpa [#allocation6], 1 }
 0x14e   :  { %252 = vsyncpa [#allocation4], 1 }
 0x14f   :  { %254 = vsyncpa [#allocation4 + $0x1], 1 }

</bundles_post_ra>
